<compile_context>
chip_gen: v5e
topology: v5e:2x2
jax: 0.10.0
libtpu: 0.0.40
codegen_flags: <defaults>
</compile_context>

<pallas_src>
import math

import jax
import jax.numpy as jnp
import numpy as np
from jax.experimental import pallas as pl
from jax.experimental.pallas import tpu as pltpu


def _round_up(x, m):
    return (x + m - 1) // m * m


def _timestep_embedder_kernel(t_ref, freqs_ref, phase_ref, w1_ref, b1_ref,
                              w2_ref, b2_ref, o_ref):
    """Fused sinusoidal embedding -> Linear -> SiLU -> Linear for one N-tile."""
    t = t_ref[...]                                       # (TN, 1) f32
    # Phase-folded embedding: cos(x) = sin(x + pi/2).  A single sin over the
    # duplicated-frequency row with a per-lane phase produces
    # [cos(t*f) | sin(t*f)] without evaluating both branches of a select.
    emb = jnp.sin(t * freqs_ref[...] + phase_ref[...])   # (TN, D) f32

    # MLP: Linear(D->H) -> SiLU -> Linear(H->H).  bf16 MXU inputs, f32 acc.
    h = jnp.dot(emb.astype(jnp.bfloat16), w1_ref[...],
                preferred_element_type=jnp.float32)
    h = h + b1_ref[...]                                  # (TN, H) + (1, H)
    h = h * jax.nn.sigmoid(h)                            # SiLU (sigmoid -> EUP)

    out = jnp.dot(h.astype(jnp.bfloat16), w2_ref[...],
                  preferred_element_type=jnp.float32)
    o_ref[...] = (out + b2_ref[...]).astype(o_ref.dtype)


def timestep_embedder(t, w1, b1, w2, b2, *, frequency_embedding_size=64,
                      max_period=10000.0, block_n=512, out_dtype=jnp.float32):
    """Pallas implementation of TimestepEmbedder.forward(t).

    Args:
      t:  (N,) float timesteps (may be fractional).
      w1: (frequency_embedding_size, hidden) first Linear weight (in, out).
      b1: (hidden,) first Linear bias.
      w2: (hidden, hidden) second Linear weight (in, out).
      b2: (hidden,) second Linear bias.
    Returns:
      (N, hidden) embeddings in `out_dtype`.
    """
    D = frequency_embedding_size
    # TODO(synk): odd frequency_embedding_size would need the torch zero-pad
    # column branch; the module default (64) is even.
    assert D % 2 == 0, "odd frequency_embedding_size not supported"
    half = D // 2
    N = t.shape[0]
    hidden = w1.shape[1]

    # Row-tile the batch: TN multiple of 8 (sublane), N padded to multiple of TN.
    tn = min(block_n, _round_up(N, 8))
    n_pad = _round_up(N, tn)
    grid = (n_pad // tn,)

    t2d = jnp.zeros((n_pad, 1), jnp.float32).at[:N, 0].set(t.astype(jnp.float32))

    # Frequencies duplicated across both halves; phase = pi/2 on the cos half.
    freqs = np.exp(-math.log(max_period) *
                   np.arange(half, dtype=np.float32) / half)
    freqs_full = jnp.asarray(np.concatenate([freqs, freqs])[None, :])      # (1, D)
    phase = jnp.asarray(np.concatenate(
        [np.full(half, np.pi / 2, np.float32),
         np.zeros(half, np.float32)])[None, :])                            # (1, D)

    b1_2d = b1.reshape(1, hidden).astype(jnp.float32)
    b2_2d = b2.reshape(1, hidden).astype(jnp.float32)
    w1_bf = w1.astype(jnp.bfloat16)   # bf16 weights: half the DMA bytes,
    w2_bf = w2.astype(jnp.bfloat16)   # native MXU input rate; f32 accumulate.

    out_isize = jnp.dtype(out_dtype).itemsize
    cost = pl.CostEstimate(
        flops=2 * n_pad * (D * hidden + hidden * hidden),
        transcendentals=n_pad * (D + hidden),
        bytes_accessed=(D * hidden + hidden * hidden) * 2      # bf16 weights
        + 2 * hidden * 4                                       # biases
        + n_pad * 4                                            # t
        + n_pad * hidden * out_isize,                          # output
    )

    const = lambda i: (0, 0)
    out = pl.pallas_call(
        _timestep_embedder_kernel,
        out_shape=jax.ShapeDtypeStruct((n_pad, hidden), out_dtype),
        grid=grid,
        in_specs=[
            pl.BlockSpec((tn, 1), lambda i: (i, 0)),     # t          (pipelined)
            pl.BlockSpec((1, D), const),                 # freqs      (resident)
            pl.BlockSpec((1, D), const),                 # phase      (resident)
            pl.BlockSpec((D, hidden), const),            # w1         (resident)
            pl.BlockSpec((1, hidden), const),            # b1         (resident)
            pl.BlockSpec((hidden, hidden), const),       # w2         (resident)
            pl.BlockSpec((1, hidden), const),            # b2         (resident)
        ],
        out_specs=pl.BlockSpec((tn, hidden), lambda i: (i, 0)),
        compiler_params=pltpu.CompilerParams(
            dimension_semantics=("parallel",)),          # 2 TCs on v7x
        cost_estimate=cost,
    )(t2d, freqs_full, phase, w1_bf, b1_2d, w2_bf, b2_2d)
    return out[:N]


def timestep_embedder_reference(t, w1, b1, w2, b2, *,
                                frequency_embedding_size=64,
                                max_period=10000.0):
    """Pure-JAX reference mirroring the PyTorch forward pass (all f32)."""
    D = frequency_embedding_size
    half = D // 2
    freqs = jnp.exp(-math.log(max_period) *
                    jnp.arange(half, dtype=jnp.float32) / half)
    args = t[:, None].astype(jnp.float32) * freqs[None, :]
    emb = jnp.concatenate([jnp.cos(args), jnp.sin(args)], axis=-1)
    h = emb @ w1 + b1[None, :]
    h = h * jax.nn.sigmoid(h)
    return h @ w2 + b2[None, :]


if __name__ == "__main__":
    N = 8                       # batch of timesteps
    freq_dim = 64               # frequency_embedding_size (module default)
    hidden = 128                # hidden_size (lane-dense: full 128-lane vregs)

    key = jax.random.PRNGKey(0)
    k_t, k_w1, k_b1, k_w2, k_b2 = jax.random.split(key, 5)
    t = jax.random.uniform(k_t, (N,), dtype=jnp.float32) * 1000.0
    w1 = 0.05 * jax.random.normal(k_w1, (freq_dim, hidden), dtype=jnp.float32)
    b1 = 0.05 * jax.random.normal(k_b1, (hidden,), dtype=jnp.float32)
    w2 = 0.05 * jax.random.normal(k_w2, (hidden, hidden), dtype=jnp.float32)
    b2 = 0.05 * jax.random.normal(k_b2, (hidden,), dtype=jnp.float32)

    out = timestep_embedder(t, w1, b1, w2, b2,
                            frequency_embedding_size=freq_dim)
    out = jax.block_until_ready(out)

    ref = timestep_embedder_reference(t, w1, b1, w2, b2,
                                      frequency_embedding_size=freq_dim)
    np.testing.assert_allclose(np.asarray(out), np.asarray(ref),
                               rtol=2e-2, atol=2e-2)

    print("KERNEL_OK")
</pallas_src>

<mosaic_0001>
module attributes {stable_mosaic.version = 11 : i64} {
  func.func @_timestep_embedder_kernel(%arg0: i32, %arg1: memref<8x1xf32, #tpu.memory_space<vmem>>, %arg2: memref<1x64xf32, #tpu.memory_space<vmem>>, %arg3: memref<1x64xf32, #tpu.memory_space<vmem>>, %arg4: memref<64x128xbf16, #tpu.memory_space<vmem>>, %arg5: memref<1x128xf32, #tpu.memory_space<vmem>>, %arg6: memref<128x128xbf16, #tpu.memory_space<vmem>>, %arg7: memref<1x128xf32, #tpu.memory_space<vmem>>, %arg8: memref<8x128xf32, #tpu.memory_space<vmem>>) attributes {dimension_semantics = [#tpu.dimension_semantics<parallel>], iteration_bounds = array<i64: 1>, scalar_prefetch = 0 : i64, scratch_operands = 0 : i64, tpu.core_type = #tpu.core_type<tc>, window_params = [{transform_indices = @transform_0, window_bounds = array<i64: 8, 1>}, {pipeline_mode = #tpu.pipeline_mode<synchronous>, transform_indices = @transform_1, window_bounds = array<i64: 1, 64>}, {pipeline_mode = #tpu.pipeline_mode<synchronous>, transform_indices = @transform_2, window_bounds = array<i64: 1, 64>}, {pipeline_mode = #tpu.pipeline_mode<synchronous>, transform_indices = @transform_3, window_bounds = array<i64: 64, 128>}, {pipeline_mode = #tpu.pipeline_mode<synchronous>, transform_indices = @transform_4, window_bounds = array<i64: 1, 128>}, {pipeline_mode = #tpu.pipeline_mode<synchronous>, transform_indices = @transform_5, window_bounds = array<i64: 128, 128>}, {pipeline_mode = #tpu.pipeline_mode<synchronous>, transform_indices = @transform_6, window_bounds = array<i64: 1, 128>}, {transform_indices = @transform_7, window_bounds = array<i64: 8, 128>}]} {
    %c0 = arith.constant 0 : index
    %c0_0 = arith.constant 0 : index
    %0 = vector.load %arg1[%c0, %c0_0] : memref<8x1xf32, #tpu.memory_space<vmem>>, vector<8x1xf32>
    %c0_1 = arith.constant 0 : index
    %c0_2 = arith.constant 0 : index
    %1 = vector.load %arg2[%c0_1, %c0_2] : memref<1x64xf32, #tpu.memory_space<vmem>>, vector<1x64xf32>
    %2 = vector.broadcast %0 : vector<8x1xf32> to vector<8x64xf32>
    %3 = vector.broadcast %1 : vector<1x64xf32> to vector<8x64xf32>
    %4 = arith.mulf %2, %3 : vector<8x64xf32>
    %c0_3 = arith.constant 0 : index
    %c0_4 = arith.constant 0 : index
    %5 = vector.load %arg3[%c0_3, %c0_4] : memref<1x64xf32, #tpu.memory_space<vmem>>, vector<1x64xf32>
    %6 = vector.broadcast %5 : vector<1x64xf32> to vector<8x64xf32>
    %7 = arith.addf %4, %6 : vector<8x64xf32>
    %8 = math.sin %7 : vector<8x64xf32>
    %9 = arith.truncf %8 : vector<8x64xf32> to vector<8x64xbf16>
    %c0_5 = arith.constant 0 : index
    %c0_6 = arith.constant 0 : index
    %10 = vector.load %arg4[%c0_5, %c0_6] : memref<64x128xbf16, #tpu.memory_space<vmem>>, vector<64x128xbf16>
    %cst = arith.constant dense<0.000000e+00> : vector<8x128xf32>
    %11 = tpu.matmul %9, %10, %cst {dimension_numbers = #tpu.dot_dimension_numbers<[1], [0], [0], [1], [0, 0, 1, 1], [], []>} : vector<8x64xbf16>, vector<64x128xbf16>, vector<8x128xf32> -> vector<8x128xf32>
    %c0_7 = arith.constant 0 : index
    %c0_8 = arith.constant 0 : index
    %12 = vector.load %arg5[%c0_7, %c0_8] : memref<1x128xf32, #tpu.memory_space<vmem>>, vector<1x128xf32>
    %13 = vector.broadcast %12 : vector<1x128xf32> to vector<8x128xf32>
    %14 = arith.addf %11, %13 : vector<8x128xf32>
    %15 = arith.negf %14 : vector<8x128xf32>
    %16 = math.exp %15 : vector<8x128xf32>
    %cst_9 = arith.constant 1.000000e+00 : f32
    %17 = vector.broadcast %cst_9 : f32 to vector<8x128xf32>
    %18 = arith.addf %17, %16 : vector<8x128xf32>
    %19 = arith.divf %17, %18 : vector<8x128xf32>
    %20 = arith.mulf %14, %19 : vector<8x128xf32>
    %21 = arith.truncf %20 : vector<8x128xf32> to vector<8x128xbf16>
    %c0_10 = arith.constant 0 : index
    %c0_11 = arith.constant 0 : index
    %22 = vector.load %arg6[%c0_10, %c0_11] : memref<128x128xbf16, #tpu.memory_space<vmem>>, vector<128x128xbf16>
    %cst_12 = arith.constant dense<0.000000e+00> : vector<8x128xf32>
    %23 = tpu.matmul %21, %22, %cst_12 {dimension_numbers = #tpu.dot_dimension_numbers<[1], [0], [0], [1], [0, 0, 1, 1], [], []>} : vector<8x128xbf16>, vector<128x128xbf16>, vector<8x128xf32> -> vector<8x128xf32>
    %c0_13 = arith.constant 0 : index
    %c0_14 = arith.constant 0 : index
    %24 = vector.load %arg7[%c0_13, %c0_14] : memref<1x128xf32, #tpu.memory_space<vmem>>, vector<1x128xf32>
    %25 = vector.broadcast %24 : vector<1x128xf32> to vector<8x128xf32>
    %26 = arith.addf %23, %25 : vector<8x128xf32>
    %c0_15 = arith.constant 0 : index
    %c0_16 = arith.constant 0 : index
    %27 = vector.load %arg8[%c0_15, %c0_16] : memref<8x128xf32, #tpu.memory_space<vmem>>, vector<8x128xf32>
    tpu.vector_store %arg8[%c0_15, %c0_16], %26 {strides = array<i32>} : memref<8x128xf32, #tpu.memory_space<vmem>>, vector<8x128xf32>,
    return
  }
  func.func @transform_0(%arg0: i32) -> (i32, i32) {
    %c0_i32 = arith.constant 0 : i32
    %c0_i32_0 = arith.constant 0 : i32
    return %arg0, %c0_i32 : i32, i32
  }
  func.func @transform_1(%arg0: i32) -> (i32, i32) {
    %c0_i32 = arith.constant 0 : i32
    %c0_i32_0 = arith.constant 0 : i32
    %c0_i32_1 = arith.constant 0 : i32
    return %c0_i32, %c0_i32_0 : i32, i32
  }
  func.func @transform_2(%arg0: i32) -> (i32, i32) {
    %c0_i32 = arith.constant 0 : i32
    %c0_i32_0 = arith.constant 0 : i32
    %c0_i32_1 = arith.constant 0 : i32
    return %c0_i32, %c0_i32_0 : i32, i32
  }
  func.func @transform_3(%arg0: i32) -> (i32, i32) {
    %c0_i32 = arith.constant 0 : i32
    %c0_i32_0 = arith.constant 0 : i32
    %c0_i32_1 = arith.constant 0 : i32
    return %c0_i32, %c0_i32_0 : i32, i32
  }
  func.func @transform_4(%arg0: i32) -> (i32, i32) {
    %c0_i32 = arith.constant 0 : i32
    %c0_i32_0 = arith.constant 0 : i32
    %c0_i32_1 = arith.constant 0 : i32
    return %c0_i32, %c0_i32_0 : i32, i32
  }
  func.func @transform_5(%arg0: i32) -> (i32, i32) {
    %c0_i32 = arith.constant 0 : i32
    %c0_i32_0 = arith.constant 0 : i32
    %c0_i32_1 = arith.constant 0 : i32
    return %c0_i32, %c0_i32_0 : i32, i32
  }
  func.func @transform_6(%arg0: i32) -> (i32, i32) {
    %c0_i32 = arith.constant 0 : i32
    %c0_i32_0 = arith.constant 0 : i32
    %c0_i32_1 = arith.constant 0 : i32
    return %c0_i32, %c0_i32_0 : i32, i32
  }
  func.func @transform_7(%arg0: i32) -> (i32, i32) {
    %c0_i32 = arith.constant 0 : i32
    %c0_i32_0 = arith.constant 0 : i32
    return %arg0, %c0_i32 : i32, i32
  }
}

</mosaic_0001>

<bundles_post_ra>
// kernel: tpu_custom_call.1
= control target key start
LH: loop header
LB: loop body
LE: loop exit
PB: predicated region body
PF: predicated region fallthrough
CT: control target
= control target key end

     0   :  { %12 = vsyncpa [#allocation3], 0  ;;  %s707_s0 = inlined_call_operand.vmem [shape: f32[8,1], index: 0, kind: input, shape index: {}]   ;;  %s708_s1 = inlined_call_operand.vmem [shape: f32[1,64], index: 1, kind: input, shape index: {}]   ;;  %s709_s2 = inlined_call_operand.vmem [shape: f32[1,64], index: 2, kind: input, shape index: {}]   ;;  %s710_s3 = inlined_call_operand.hbm [shape: bf16[64,128], index: 3, kind: input, shape index: {}]   ;;  %s711_s4 = inlined_call_operand.vmem [shape: f32[1,128], index: 4, kind: input, shape index: {}]   ;;  %s712_s5 = inlined_call_operand.hbm [shape: bf16[128,128], index: 5, kind: input, shape index: {}]   ;;  %s713_s6 = inlined_call_operand.vmem [shape: f32[1,128], index: 6, kind: input, shape index: {}]   ;;  %s714_s7 = inlined_call_operand.hbm [shape: f32[8,128], index: 7, kind: output, shape index: {}]  }
   0x1   :  { %13 = vsyncpa [#allocation6], 0 }
   0x2   :  { %14 = vsyncpa [#allocation4], 0  ;;  %s25_s26 = sshll.u32 %s710_s3, 4  ;;  %s570_s27 = smov [#allocation2]   ;;  %s26_s26 = int_to_ptr.hbm [resolvable:$true] %s25_s26 }
   0x3   :  { %s27_s28 = sshll.u32 %s570_s27, 4  ;;  %s40_s8 = sshll.u32 %s712_s5, 4  ;;  %s28_s28 = int_to_ptr.vmem [resolvable:$true] %s27_s28  ;;  %s41_s8 = int_to_ptr.hbm [resolvable:$true] %s40_s8 }
   0x4   :  { %s571_s9 = smov 64   ;;  %s572_s10 = smov 4  }
   0x5   :  { %33 = dma.hbm_to_vmem [thread:$0]  %s26_s26, 512, %s28_s28, [#allocation3], %s571_s9, %s571_s9, %s572_s10  }
   0x6   :  { %s573_s11 = smov [#allocation5]  }
   0x7   :  { %s42_s12 = sshll.u32 %s573_s11, 4  ;;  %s43_s12 = int_to_ptr.vmem [resolvable:$true] %s42_s12 }
   0x8   :  { %48 = dma.hbm_to_vmem [thread:$0]  %s41_s8, 1024, %s43_s12, [#allocation6], %s571_s9, %s571_s9, %s572_s10  }
   0x9   :  { %564 = dma.done.wait [#allocation3], 512  }
   0xa   :  { %565 = vsyncadd [#allocation3], 4294966784 }
   0xb   :  { %566 = dma.done.wait [#allocation6], 1024  }
   0xc   :  { %567 = vsyncadd [#allocation6], 4294966272  ;;  %v574_v0 = vmov 0   ;;  %v60_v1 = vld [vmem:[%s707_s0] sm:$0xff]  ;;  %v462_v6 = vld [vmem:[#allocation2 + $0x18] sm:$0xff]  ;;  %s581_s17 = smov [#allocation7]  }
   0xd   :  { %483 = vset.pattern.permute.xlu0 %v574_v0  ;;  %v484_v2 = vld [vmem:[%s708_s1] ss:$0 sm:$0xff]  ;;  %276 = vmatpush.bf16.msra.mxu0 %v462_v6  ;;  %v461_v8 = vld [vmem:[#allocation2 + $0x10] sm:$0xff]  ;;  %v460_v11 = vld [vmem:[#allocation2 + $0x8] sm:$0xff]  ;;  %v575_v22 = vmov 683565275  }
   0xe   :  { %64 = vperm.xlu0 %483, %v60_v1   ;;  %v485_v3 = vld [vmem:[%s709_s2] ss:$0 sm:$0xff]  ;;  %v576_v24 = vmov 2475754826   ;;  %v577_v27 = vmov 2131351028  }
   0xf   :  { %v459_v15 = vld [vmem:[#allocation2] sm:$0xff]  ;;  %v578_v30 = vmov 2102212464   ;;  %v579_v33 = vmov 920167782   ;;  %s393_s18 = sshll.u32 %s581_s17, 4  ;;  %s394_s18 = int_to_ptr.vmem [resolvable:$true] %s393_s18 }
  0x10   :  { %v580_v36 = vmov 1326507024   ;;  %s395_s21 = sshll.u32 %s714_s7, 4  ;;  %s396_s21 = int_to_ptr.hbm [resolvable:$true] %s395_s21 }
  0x11   :  { %277 = vmatpush.bf16.msra.mxu0 %v461_v8 }
  0x15   :  { %278 = vmatpush.bf16.msra.mxu0 %v460_v11 }
  0x19   :  { %279 = vmatpush.bf16.msra.mxu0 %v459_v15 }
  0x80   :  { %v65_v4 = vpop.permute.xlu0 %64 }
  0x81   :  { %v70_v5 = vmul.f32 %v484_v2, %v65_v4 }
  0x83   :  { %v638_v7 = vadd.f32 %v485_v3, %v70_v5 }
  0x85   :  { %v79_v9 = vand.u32 2139095040, %v638_v7  ;;  %v76_v13 = vand.u32 2147483647, %v638_v7  ;;  %vm78_vm12 = vcmp.lt.s32.totalorder %v638_v7, 0 }
  0x87   :  { %v80_v10 = vshrl.u32 %v79_v9, 23  ;;  %v83_v16 = vand.u32 8388607, %v76_v13  ;;  %vm77_vm13 = vcmp.le.f32.partialorder %v76_v13, 0.7853982 }
  0x89   :  { %v406_v12 = vadd.s32 4294967169, %v80_v10  ;;  %v84_v20 = vor.u32 8388608, %v83_v16 }
  0x8b   :  { %v86_v14 = vadd.s32 1, %v406_v12  ;;  %v655_v43 = vshll.u32 %v84_v20, 8 }
  0x8d   :  { %vm87_vm0 = vcmp.gt.s32.totalorder %v86_v14, 0  ;;  %v125_v52 = vand.u32 65535, %v655_v43  ;;  %v126_v57 = vshrl.u32 %v655_v43, 16 }
  0x8e   :  { %v88_v17 = vsel %vm87_vm0, %v86_v14, 0 }
  0x8f   :  { %v90_v18 = vand.u32 31, %v88_v17  ;;  %v646_v21 = vshrl.u32 %v88_v17, 5 }
  0x91   :  { %v644_v19 = vsub.s32 32, %v90_v18  ;;  %v93_v23 = vshll.u32 %v575_v22, %v90_v18  ;;  %v96_v25 = vshll.u32 %v576_v24, %v90_v18  ;;  %v99_v29 = vshll.u32 %v577_v27, %v90_v18 }
  0x92   :  { %v102_v32 = vshll.u32 %v578_v30, %v90_v18  ;;  %v105_v35 = vshll.u32 %v579_v33, %v90_v18  ;;  %vm108_vm1 = vcmp.lt.s32.totalorder %v646_v21, 1  ;;  %vm111_vm2 = vcmp.lt.s32.totalorder %v646_v21, 4 }
  0x93   :  { %v94_v26 = vshrl.u32 %v576_v24, %v644_v19  ;;  %v97_v28 = vshrl.u32 %v577_v27, %v644_v19  ;;  %v100_v31 = vshrl.u32 %v578_v30, %v644_v19  ;;  %v103_v34 = vshrl.u32 %v579_v33, %v644_v19 }
  0x94   :  { %v106_v37 = vshrl.u32 %v580_v36, %v644_v19  ;;  %vm110_vm3 = vcmp.lt.s32.totalorder %v646_v21, 3  ;;  %vm109_vm4 = vcmp.lt.s32.totalorder %v646_v21, 2  ;;  %v92_v16 = vshrl.u32 %v575_v22, %v644_v19 }
  0x95   :  { %v95_v38 = vor.u32 %v94_v26, %v93_v23  ;;  %v98_v39 = vor.u32 %v97_v28, %v96_v25  ;;  %v101_v40 = vor.u32 %v100_v31, %v99_v29  ;;  %v104_v41 = vor.u32 %v103_v34, %v102_v32 }
  0x96   :  { %v107_v42 = vor.u32 %v106_v37, %v105_v35 }
  0x97   :  { %v116_v44 = vsel %vm108_vm1, %v95_v38, %v98_v39  ;;  %v120_v45 = vsel %vm108_vm1, %v98_v39, %v101_v40  ;;  %v117_v46 = vsel %vm111_vm2, %v104_v41, 920167782  ;;  %v113_v10 = vsel %vm111_vm2, %v101_v40, 2102212464 }
  0x98   :  { %v121_v47 = vsel %vm111_vm2, %v107_v42, 1326507024  ;;  %v118_v48 = vsel %vm110_vm3, %v101_v40, %v117_v46  ;;  %v112_v26 = vsel %vm108_vm1, %v92_v16, %v95_v38  ;;  %v114_v27 = vsel %vm110_vm3, %v98_v39, %v113_v10 }
  0x99   :  { %v122_v49 = vsel %vm110_vm3, %v104_v41, %v121_v47  ;;  %v119_v50 = vsel %vm109_vm4, %v116_v44, %v118_v48  ;;  %v115_v19 = vsel %vm109_vm4, %v112_v26, %v114_v27  ;;  %vm219_vm1 = vweird.f32 %v638_v7  ;;  %v470_v27 = vld [vmem:[#allocation5 + $0x38] sm:$0xff] }
  0x9a   :  { %v123_v51 = vsel %vm109_vm4, %v120_v45, %v122_v49  ;;  %v149_v55 = vand.u32 65535, %v119_v50  ;;  %v150_v56 = vshrl.u32 %v119_v50, 16  ;;  %v169_v34 = vmul.u32 %v655_v43, %v115_v19  ;;  %374 = vmatpush.bf16.msra.mxu1 %v470_v27  ;;  %v465_v19 = vld [vmem:[#allocation5 + $0x10] sm:$0xff] }
  0x9b   :  { %v127_v53 = vand.u32 65535, %v123_v51  ;;  %v128_v54 = vshrl.u32 %v123_v51, 16  ;;  %vm268_vm2 = vcmask 523264  }
  0x9c   :  { %v152_v59 = vmul.u32 %v150_v56, %v125_v52  ;;  %v153_v61 = vmul.u32 %v149_v55, %v126_v57  ;;  %v151_v1 = vmul.u32 %v149_v55, %v125_v52  ;;  %v154_v4 = vmul.u32 %v150_v56, %v126_v57 }
  0x9d   :  { %v130_v58 = vmul.u32 %v128_v54, %v125_v52  ;;  %v131_v60 = vmul.u32 %v127_v53, %v126_v57  ;;  %v129_v62 = vmul.u32 %v127_v53, %v125_v52  ;;  %v132_v3 = vmul.u32 %v128_v54, %v126_v57 }
  0x9e   :  { %v155_v2 = vshll.u32 %v152_v59, 16  ;;  %v157_v6 = vshll.u32 %v153_v61, 16  ;;  %v156_v24 = vshrl.u32 %v152_v59, 16  ;;  %v158_v30 = vshrl.u32 %v153_v61, 16 }
  0x9f   :  { %v133_v63 = vshll.u32 %v130_v58, 16  ;;  %v135_v5 = vshll.u32 %v131_v60, 16  ;;  %v134_v20 = vshrl.u32 %v130_v58, 16  ;;  %v136_v28 = vshrl.u32 %v131_v60, 16 }
  0xa0   :  { %vm159_vm6 = vc.u32 %v151_v1, %v155_v2  ;;  %v161_v9 = vadd.s32 %v155_v2, %v151_v1 }
  0xa1   :  { %vm137_vm5 = vc.u32 %v129_v62, %v133_v63  ;;  %v139_v8 = vadd.s32 %v133_v63, %v129_v62  ;;  %v160_v12 = vsel %vm159_vm6, 1, %v574_v0 }
  0xa2   :  { %v138_v11 = vsel %vm137_vm5, 1, %v574_v0  ;;  %v162_v15 = vadd.s32 %v160_v12, %v154_v4  ;;  %vm163_vm8 = vc.u32 %v161_v9, %v157_v6  ;;  %v165_v32 = vadd.s32 %v161_v9, %v157_v6 }
  0xa3   :  { %v140_v14 = vadd.s32 %v138_v11, %v132_v3  ;;  %vm141_vm7 = vc.u32 %v139_v8, %v135_v5  ;;  %v164_v18 = vsel %vm163_vm8, 1, %v574_v0 }
  0xa4   :  { %v142_v17 = vsel %vm141_vm7, 1, %v574_v0  ;;  %v166_v25 = vadd.s32 %v164_v18, %v162_v15 }
  0xa5   :  { %v144_v23 = vadd.s32 %v142_v17, %v140_v14 }
  0xa6   :  { %v167_v31 = vadd.s32 %v166_v25, %v156_v24 }
  0xa7   :  { %v145_v29 = vadd.s32 %v144_v23, %v134_v20 }
  0xa8   :  { %v168_v0 = vadd.s32 %v167_v31, %v158_v30  ;;  %v467_v30 = vld [vmem:[#allocation5 + $0x20] sm:$0xff]  ;;  %v466_v31 = vld [vmem:[#allocation5 + $0x18] sm:$0xff] }
  0xa9   :  { %v146_v22 = vadd.s32 %v145_v29, %v136_v28  ;;  %v469_v28 = vld [vmem:[#allocation5 + $0x30] sm:$0xff]  ;;  %v468_v29 = vld [vmem:[#allocation5 + $0x28] sm:$0xff] }
  0xaa   :  { %v172_v33 = vadd.s32 1, %v168_v0  ;;  %375 = vmatpush.bf16.msra.mxu1 %v469_v28 }
  0xab   :  { %vm171_vm9 = vc.u32 %v146_v22, %v165_v32  ;;  %v170_v46 = vadd.s32 %v165_v32, %v146_v22  ;;  %v464_v22 = vld [vmem:[#allocation5 + $0x8] sm:$0xff]  ;;  %v463_v32 = vld [vmem:[#allocation5] sm:$0xff] }
  0xac   :  { %v173_v35 = vsel %vm171_vm9, %v172_v33, %v168_v0 }
  0xad   :  { %v174_v36 = vadd.s32 %v173_v35, %v169_v34 }
  0xae   :  { %376 = vmatpush.bf16.msra.mxu1 %v468_v29 }
  0xaf   :  { %v175_v37 = vadd.s32 536870912, %v174_v36 }
  0xb1   :  { %v176_v38 = vshrl.u32 %v175_v37, 30 }
  0xb2   :  { %377 = vmatpush.bf16.msra.mxu1 %v467_v30 }
  0xb3   :  { %v177_v40 = vshll.u32 %v176_v38, 30  ;;  %v200_v59 = vsub.s32 4, %v176_v38 }
  0xb5   :  { %v178_v39 = vsub.s32 %v174_v36, %v177_v40  ;;  %v201_v1 = vsel %vm78_vm12, %v200_v59, %v176_v38 }
  0xb6   :  { %v203_v4 = vsel %vm77_vm13, 0, %v201_v1  ;;  %378 = vmatpush.bf16.msra.mxu1 %v466_v31 }
  0xb7   :  { %vm179_vm10 = vcmp.lt.s32.totalorder %v178_v39, 0  ;;  %v180_v41 = vsub.s32 0, %v178_v39  ;;  %v220_v10 = vadd.s32 3, %v203_v4 }
  0xb9   :  { %v181_v42 = vsel %vm179_vm10, %v180_v41, %v178_v39  ;;  %v221_v15 = vand.u32 3, %v220_v10 }
  0xba   :  { %v182_v44 = vclz %v181_v42  ;;  %379 = vmatpush.bf16.msra.mxu1 %v465_v19 }
  0xbb   :  { %vm223_vm14 = vcmp.eq.s32.totalorder %v221_v15, 0  ;;  %vm226_vm15 = vcmp.eq.s32.totalorder %v221_v15, 2  ;;  %vm222_vm0 = vcmp.lt.s32.totalorder %v221_v15, 2 }
  0xbc   :  { %v407_v45 = vadd.s32 4294967294, %v182_v44 }
  0xbe   :  { %vm408_vm11 = vcmp.lt.s32.totalorder %v407_v45, 0  ;;  %380 = vmatpush.bf16.msra.mxu1 %v464_v22 }
  0xbf   :  { %v185_v21 = vsel %vm408_vm11, 0, %v407_v45 }
  0xc0   :  { %v186_v47 = vsub.s32 32, %v185_v21  ;;  %v190_v48 = vsub.s32 4294967266, %v185_v21  ;;  %v187_v49 = vshll.u32 %v178_v39, %v185_v21 }
  0xc2   :  { %v188_v50 = vshrl.u32 %v170_v46, %v186_v47  ;;  %v191_v51 = vadd.s32 127, %v190_v48  ;;  %381 = vmatpush.bf16.msra.mxu1 %v463_v32 }
  0xc4   :  { %v189_v43 = vor.u32 %v188_v50, %v187_v49  ;;  %v192_v52 = vshll.u32 %v191_v51, 23  ;;  %v487_v50 = vld [vmem:[%s713_s6] ss:$0 sm:$0xff] }
  0xc6   :  { %v193_v53 = vor.u32 4788187, %v192_v52  ;;  %v196_v55 = vcvt.s32.f32 %v189_v43 }
  0xc8   :  { %v194_v54 = vand.u32 2147483647, %v193_v53 }
  0xca   :  { %v197_v56 = vmul.f32 %v196_v55, %v194_v54 }
  0xcc   :  { %v198_v57 = vxor.u32 2147483648, %v197_v56 }
  0xce   :  { %v199_v58 = vsel %vm78_vm12, %v198_v57, %v197_v56 }
  0xcf   :  { %v202_v60 = vsel %vm77_vm13, %v638_v7, %v199_v58  ;;  %v486_v7 = vld [vmem:[%s711_s4] ss:$0 sm:$0xff] }
  0xd0   :  { %v204_v61 = vmul.f32 %v202_v60, %v202_v60 }
  0xd2   :  { %v205_v62 = vmul.f32 -0.001358992, %v204_v61  ;;  %v212_v63 = vmul.f32 -0.00019511016, %v204_v61 }
  0xd4   :  { %v206_v2 = vadd.f32 0.041655596, %v205_v62  ;;  %v213_v3 = vadd.f32 0.008332121, %v212_v63 }
  0xd6   :  { %v207_v5 = vmul.f32 %v206_v2, %v204_v61  ;;  %v214_v6 = vmul.f32 %v213_v3, %v204_v61 }
  0xd8   :  { %v208_v8 = vadd.f32 -0.4999988, %v207_v5  ;;  %v215_v9 = vadd.f32 -0.16666654, %v214_v6 }
  0xda   :  { %v209_v11 = vmul.f32 %v208_v8, %v204_v61  ;;  %v216_v12 = vmul.f32 %v215_v9, %v204_v61 }
  0xdc   :  { %v210_v14 = vadd.f32 1.0, %v209_v11  ;;  %v217_v13 = vadd.f32 1.0, %v216_v12 }
  0xde   :  { %v218_v16 = vmul.f32 %v217_v13, %v202_v60  ;;  %v227_v17 = vxor.u32 2147483648, %v210_v14 }
  0xe0   :  { %v224_v18 = vxor.u32 2147483648, %v218_v16  ;;  %v228_v23 = vsel %vm226_vm15, %v227_v17, %v218_v16 }
  0xe2   :  { %v225_v20 = vsel %vm223_vm14, %v210_v14, %v224_v18 }
  0xe3   :  { %v229_v24 = vsel %vm222_vm0, %v225_v20, %v228_v23 }
  0xe4   :  { %v230_v25 = vsel %vm219_vm1, nan, %v229_v24 }
  0xe5   :  { %v231_v26 = vpack.c.bf16 %v230_v25, %v230_v25 }
  0xe7   :  { %425 = vmatmul.msk.bf16.vlgmr.msra.gmra.mxu0 %vm268_vm2, %v231_v26 }
 0x164   :  { %v281_v0 = vpop.f32.mrf.mxu0 }
 0x165   :  { %v282_v33 = vadd.f32 %v486_v7, %v281_v0 }
 0x167   :  { %v426_v34 = vmul.f32 -1.442695, %v282_v33 }
 0x169   :  { %488 = vpow2.f32 %v426_v34 }
 0x16c   :  { %v283_v35 = vpop.f32.mrf.mxu0 }
 0x16f   :  { %v489_v36 = vpop.eup %488 }
 0x170   :  { %v288_v37 = vadd.f32 1.0, %v489_v36 }
 0x172   :  { %490 = vrcp.f32 %v288_v37  ;;  %v300_v41 = vand.u32 2147483648, %v288_v37  ;;  %v298_v44 = vand.u32 2147483647, %v288_v37  ;;  %vm294_vm4 = vweird.f32 %v288_v37 }
 0x174   :  { %v301_v21 = vor.u32 1.1754944e-38, %v300_v41  ;;  %vm299_vm6 = vcmp.eq.f32.partialorder %v298_v44, 8.507059e+37 }
 0x178   :  { %v491_v38 = vpop.eup %490 }
 0x179   :  { %v290_v40 = vmul.f32 %v491_v38, %v288_v37  ;;  %vm295_vm3 = vweird.f32 %v491_v38 }
 0x17a   :  { %vm296_vm5 = vmor %vm294_vm4, %vm295_vm3 }
 0x17b   :  { %v291_v39 = vsub.f32 1.0, %v290_v40 }
 0x17d   :  { %v292_v42 = vmul.f32 %v491_v38, %v291_v39 }
 0x17f   :  { %v293_v45 = vadd.f32 %v491_v38, %v292_v42 }
 0x181   :  { %v297_v46 = vsel %vm296_vm5, %v491_v38, %v293_v45 }
 0x182   :  { %v302_v47 = vsel %vm299_vm6, %v301_v21, %v297_v46 }
 0x183   :  { %v304_v48 = vmul.f32 %v302_v47, %v282_v33 }
 0x185   :  { %v305_v49 = vpack.c.bf16 %v304_v48, %v304_v48 }
 0x187   :  { %382 = vmatmul.bf16.vlgmr.msra.gmra.mxu1 %v305_v49 }
 0x204   :  { %v383_v51 = vpop.f32.mrf.mxu1 }
 0x205   :  { %v384_v43 = vadd.f32 %v487_v50, %v383_v51 }
 0x207   :  { %387 = vst [vmem:[#allocation7] sm:$0xff] %v384_v43 }
 0x208   :  { %398 = dma.vmem_to_hbm [thread:$0]  %s394_s18, 128, %s396_s21, [#allocation4]  }
 0x20c   :  { %v385_v52 = vpop.f32.mrf.mxu1 }
 0x20d   :  { %568 = dma.done.wait [#allocation4], 128  }
 0x20e   :  { %569 = vsyncadd [#allocation4], 4294967168 }
 0x20f   :  { %403 = vsyncpa [#allocation3], 1 }
 0x210   :  { %404 = vsyncpa [#allocation6], 1 }
 0x211   :  { %405 = vsyncpa [#allocation4], 1 }

</bundles_post_ra>
